<compile_context>
chip_gen: v5e
topology: v5e:2x2
jax: 0.10.0
libtpu: 0.0.40
codegen_flags: <defaults>
</compile_context>

<pallas_src>
import jax
import jax.numpy as jnp
from jax.experimental import pallas as pl
from jax.experimental.pallas import tpu as pltpu


def _round_up(x, m):
    return (x + m - 1) // m * m


def _textcnn_kernel(x_ref, wbig_ref, bias_ref, mask_ref, fcw_ref, fcb_ref, out_ref):
    """One batch tile.

    x_ref:    [B_TILE*S_pad, max_fs*emb_dim]  bf16  im2col activations
    wbig_ref: [max_fs*emb_dim, C]             bf16  fused conv weight (C = n_fs*n_filters)
    bias_ref: [1, C]                          f32   concatenated conv bias
    mask_ref: [B_TILE*S_pad, C]               f32   1.0 where conv position is valid
    fcw_ref:  [C, N_PAD]                      bf16  fc weight, zero-padded to 128 lanes
    fcb_ref:  [1, N_PAD]                      f32   fc bias, zero-padded
    out_ref:  [B_TILE, N_PAD]                 f32   lane-dense logits slab
    """
    b_tile = out_ref.shape[0]
    rows, c = mask_ref.shape
    s_pad = rows // b_tile

    # Conv over every filter size / tap offset == one big MXU matmul.
    prod = jnp.dot(x_ref[...], wbig_ref[...],
                   preferred_element_type=jnp.float32)            # [rows, C] f32
    act = jnp.maximum(prod + bias_ref[...], 0.0)                  # bias + ReLU
    act = act * mask_ref[...]                                     # zero invalid positions (post-ReLU safe)

    # Global max-pool over the sequence axis.
    pooled = jnp.max(act.reshape(b_tile, s_pad, c), axis=1)       # [B_TILE, C]

    # TODO(synk): Dropout is treated as identity (inference semantics).
    logits = jnp.dot(pooled.astype(jnp.bfloat16), fcw_ref[...],
                     preferred_element_type=jnp.float32) + fcb_ref[...]
    out_ref[...] = logits


def textcnn_forward(token_ids, params, filter_sizes, *, max_b_tile=256):
    """token_ids: [seq_len, batch] int32 (same convention as the torch module)."""
    emb_table = params["embedding"]                       # [vocab, emb_dim]
    seq_len, batch = token_ids.shape
    emb_dim = emb_table.shape[1]
    n_filters = params["conv_w"][0].shape[2]
    n_fs = len(filter_sizes)
    output_dim = params["fc_w"].shape[1]
    max_fs = max(filter_sizes)
    assert seq_len >= max_fs, "sequence shorter than largest filter"

    c = n_fs * n_filters                                  # fused conv output columns
    kd = max_fs * emb_dim                                 # fused contraction dim
    n_pad = _round_up(max(output_dim, 1), 128)            # lane-dense output width
    s_pad = _round_up(seq_len, 8)                         # sublane-aligned seq length

    # ---- plain-JAX glue: permute + embedding gather + im2col stacking ----
    x = token_ids.T                                       # [B, S]
    embedded = emb_table[x].astype(jnp.float32)           # [B, S, E]
    emb_p = jnp.pad(embedded, ((0, 0), (0, s_pad - seq_len), (0, 0)))
    parts = [emb_p if k == 0 else jnp.roll(emb_p, -k, axis=1) for k in range(max_fs)]
    stacked = jnp.concatenate(parts, axis=-1).astype(jnp.bfloat16)   # [B, S_pad, kd]

    b_tile = min(max_b_tile, _round_up(batch, 8))
    b_pad = _round_up(batch, b_tile)
    if b_pad != batch:
        stacked = jnp.pad(stacked, ((0, b_pad - batch), (0, 0), (0, 0)))
    stacked2d = stacked.reshape(b_pad * s_pad, kd)        # flattened batch-tile rows

    # ---- fused conv weight [kd, c]: block (tap k, filter-size j) is w_j[k] if k < fs_j else 0
    w_big = jnp.zeros((kd, c), jnp.float32)
    for j, fs in enumerate(filter_sizes):
        wj = params["conv_w"][j]                          # [fs, emb_dim, n_filters]
        for k in range(fs):
            w_big = w_big.at[k * emb_dim:(k + 1) * emb_dim,
                             j * n_filters:(j + 1) * n_filters].set(wj[k])
    w_big = w_big.astype(jnp.bfloat16)
    bias_cat = jnp.concatenate([params["conv_b"][j] for j in range(n_fs)]
                               ).reshape(1, c).astype(jnp.float32)

    # ---- validity mask: conv position t is valid for filter size fs iff t <= seq_len - fs
    t_idx = jnp.arange(s_pad, dtype=jnp.int32)[:, None]                      # [S_pad, 1]
    thresh = jnp.concatenate([jnp.full((n_filters,), seq_len - fs, dtype=jnp.int32)
                              for fs in filter_sizes])[None, :]              # [1, c]
    mask = (t_idx <= thresh).astype(jnp.float32)                             # [S_pad, c]
    mask_full = jnp.tile(mask, (b_tile, 1))                                  # [B_TILE*S_pad, c]

    # ---- fc weight/bias zero-padded to a lane-dense 128-wide output slab ----
    fc_w = jnp.zeros((c, n_pad), jnp.float32).at[:, :output_dim].set(
        params["fc_w"]).astype(jnp.bfloat16)
    fc_b = jnp.zeros((1, n_pad), jnp.float32).at[:, :output_dim].set(
        params["fc_b"][None, :])

    grid = (b_pad // b_tile,)
    out = pl.pallas_call(
        _textcnn_kernel,
        out_shape=jax.ShapeDtypeStruct((b_pad, n_pad), jnp.float32),
        grid=grid,
        in_specs=[
            pl.BlockSpec((b_tile * s_pad, kd), lambda b: (b, 0)),   # im2col activations
            pl.BlockSpec((kd, c), lambda b: (0, 0)),                # fused conv weight
            pl.BlockSpec((1, c), lambda b: (0, 0)),                 # conv bias
            pl.BlockSpec((b_tile * s_pad, c), lambda b: (0, 0)),    # validity mask
            pl.BlockSpec((c, n_pad), lambda b: (0, 0)),             # fc weight (padded)
            pl.BlockSpec((1, n_pad), lambda b: (0, 0)),             # fc bias (padded)
        ],
        out_specs=pl.BlockSpec((b_tile, n_pad), lambda b: (b, 0)),
        compiler_params=pltpu.CompilerParams(dimension_semantics=("parallel",)),
    )(stacked2d, w_big, bias_cat, mask_full, fc_w, fc_b)
    return out[:batch, :output_dim]                        # [batch, output_dim]


def textcnn_reference(token_ids, params, filter_sizes):
    """Pure-JAX f32 reference matching the torch forward."""
    emb = params["embedding"][token_ids.T].astype(jnp.float32)   # [B, S, E]
    B, S, _ = emb.shape
    pooled = []
    for j, fs in enumerate(filter_sizes):
        w = params["conv_w"][j]                                  # [fs, E, nf]
        b = params["conv_b"][j]
        L = S - fs + 1
        conv = jnp.zeros((B, L, w.shape[2]), jnp.float32)
        for k in range(fs):
            conv = conv + jnp.einsum("ble,en->bln", emb[:, k:k + L, :], w[k])
        conv = jnp.maximum(conv + b[None, None, :], 0.0)
        pooled.append(jnp.max(conv, axis=1))                     # [B, nf]
    cat = jnp.concatenate(pooled, axis=1)                        # [B, n_fs*nf]
    return cat @ params["fc_w"] + params["fc_b"][None, :]


def init_params(key, vocab_size, embedding_dim, n_filters, filter_sizes, output_dim):
    n_keys = 2 + 2 * len(filter_sizes) + 2
    keys = jax.random.split(key, n_keys)
    params = {
        "embedding": 0.1 * jax.random.normal(keys[0], (vocab_size, embedding_dim), jnp.float32),
        "conv_w": [],
        "conv_b": [],
    }
    for i, fs in enumerate(filter_sizes):
        # stored as [fs, emb_dim, n_filters] (== torch conv weight [nf,1,fs,emb] transposed)
        params["conv_w"].append(
            0.1 * jax.random.normal(keys[1 + 2 * i], (fs, embedding_dim, n_filters), jnp.float32))
        params["conv_b"].append(
            0.1 * jax.random.normal(keys[2 + 2 * i], (n_filters,), jnp.float32))
    total = len(filter_sizes) * n_filters
    params["fc_w"] = 0.1 * jax.random.normal(keys[-2], (total, output_dim), jnp.float32)
    params["fc_b"] = 0.1 * jax.random.normal(keys[-1], (output_dim,), jnp.float32)
    return params


if __name__ == "__main__":
    vocab_size = 50
    embedding_dim = 32
    n_filters = 8
    filter_sizes = (2, 3, 4)
    output_dim = 3
    dropout = 0.5  # identity at inference
    seq_len, batch = 8, 2

    key = jax.random.PRNGKey(0)
    pkey, dkey = jax.random.split(key)
    params = init_params(pkey, vocab_size, embedding_dim, n_filters, filter_sizes, output_dim)

    # torch forward takes x of shape [seq_len, batch] of token ids
    token_ids = jax.random.randint(dkey, (seq_len, batch), 0, vocab_size, dtype=jnp.int32)

    out = textcnn_forward(token_ids, params, filter_sizes)
    out = jax.block_until_ready(out)
    assert out.shape == (batch, output_dim), out.shape
    assert jnp.all(jnp.isfinite(out))

    ref = textcnn_reference(token_ids, params, filter_sizes)
    err = float(jnp.max(jnp.abs(out - ref)))
    assert err < 2e-2, f"max abs err vs f32 reference: {err}"

    print("KERNEL_OK")
</pallas_src>

<mosaic_0001>
module attributes {stable_mosaic.version = 11 : i64} {
  func.func @_textcnn_kernel(%arg0: i32, %arg1: memref<64x128xbf16, #tpu.memory_space<vmem>>, %arg2: memref<128x24xbf16, #tpu.memory_space<vmem>>, %arg3: memref<1x24xf32, #tpu.memory_space<vmem>>, %arg4: memref<64x24xf32, #tpu.memory_space<vmem>>, %arg5: memref<24x128xbf16, #tpu.memory_space<vmem>>, %arg6: memref<1x128xf32, #tpu.memory_space<vmem>>, %arg7: memref<8x128xf32, #tpu.memory_space<vmem>>) attributes {dimension_semantics = [#tpu.dimension_semantics<parallel>], iteration_bounds = array<i64: 1>, scalar_prefetch = 0 : i64, scratch_operands = 0 : i64, tpu.core_type = #tpu.core_type<tc>, window_params = [{transform_indices = @transform_0, window_bounds = array<i64: 64, 128>}, {pipeline_mode = #tpu.pipeline_mode<synchronous>, transform_indices = @transform_1, window_bounds = array<i64: 128, 24>}, {pipeline_mode = #tpu.pipeline_mode<synchronous>, transform_indices = @transform_2, window_bounds = array<i64: 1, 24>}, {pipeline_mode = #tpu.pipeline_mode<synchronous>, transform_indices = @transform_3, window_bounds = array<i64: 64, 24>}, {pipeline_mode = #tpu.pipeline_mode<synchronous>, transform_indices = @transform_4, window_bounds = array<i64: 24, 128>}, {pipeline_mode = #tpu.pipeline_mode<synchronous>, transform_indices = @transform_5, window_bounds = array<i64: 1, 128>}, {transform_indices = @transform_6, window_bounds = array<i64: 8, 128>}]} {
    %c0 = arith.constant 0 : index
    %c0_0 = arith.constant 0 : index
    %0 = vector.load %arg1[%c0, %c0_0] : memref<64x128xbf16, #tpu.memory_space<vmem>>, vector<64x128xbf16>
    %c0_1 = arith.constant 0 : index
    %c0_2 = arith.constant 0 : index
    %1 = vector.load %arg2[%c0_1, %c0_2] : memref<128x24xbf16, #tpu.memory_space<vmem>>, vector<128x24xbf16>
    %cst = arith.constant dense<0.000000e+00> : vector<64x24xf32>
    %2 = tpu.matmul %0, %1, %cst {dimension_numbers = #tpu.dot_dimension_numbers<[1], [0], [0], [1], [0, 0, 1, 1], [], []>} : vector<64x128xbf16>, vector<128x24xbf16>, vector<64x24xf32> -> vector<64x24xf32>
    %c0_3 = arith.constant 0 : index
    %c0_4 = arith.constant 0 : index
    %3 = vector.load %arg3[%c0_3, %c0_4] : memref<1x24xf32, #tpu.memory_space<vmem>>, vector<1x24xf32>
    %4 = vector.broadcast %3 : vector<1x24xf32> to vector<64x24xf32>
    %5 = arith.addf %2, %4 : vector<64x24xf32>
    %cst_5 = arith.constant 0.000000e+00 : f32
    %6 = vector.broadcast %cst_5 : f32 to vector<64x24xf32>
    %7 = arith.maximumf %5, %6 : vector<64x24xf32>
    %c0_6 = arith.constant 0 : index
    %c0_7 = arith.constant 0 : index
    %8 = vector.load %arg4[%c0_6, %c0_7] : memref<64x24xf32, #tpu.memory_space<vmem>>, vector<64x24xf32>
    %9 = arith.mulf %7, %8 : vector<64x24xf32>
    %10 = vector.shape_cast %9 : vector<64x24xf32> to vector<8x8x24xf32>
    %cst_8 = arith.constant dense<0xFF800000> : vector<8x24xf32>
    %11 = vector.multi_reduction <maximumf>, %10, %cst_8 [1] : vector<8x8x24xf32> to vector<8x24xf32>
    %12 = arith.truncf %11 : vector<8x24xf32> to vector<8x24xbf16>
    %c0_9 = arith.constant 0 : index
    %c0_10 = arith.constant 0 : index
    %13 = vector.load %arg5[%c0_9, %c0_10] : memref<24x128xbf16, #tpu.memory_space<vmem>>, vector<24x128xbf16>
    %cst_11 = arith.constant dense<0.000000e+00> : vector<8x128xf32>
    %14 = tpu.matmul %12, %13, %cst_11 {dimension_numbers = #tpu.dot_dimension_numbers<[1], [0], [0], [1], [0, 0, 1, 1], [], []>} : vector<8x24xbf16>, vector<24x128xbf16>, vector<8x128xf32> -> vector<8x128xf32>
    %c0_12 = arith.constant 0 : index
    %c0_13 = arith.constant 0 : index
    %15 = vector.load %arg6[%c0_12, %c0_13] : memref<1x128xf32, #tpu.memory_space<vmem>>, vector<1x128xf32>
    %16 = vector.broadcast %15 : vector<1x128xf32> to vector<8x128xf32>
    %17 = arith.addf %14, %16 : vector<8x128xf32>
    %c0_14 = arith.constant 0 : index
    %c0_15 = arith.constant 0 : index
    %18 = vector.load %arg7[%c0_14, %c0_15] : memref<8x128xf32, #tpu.memory_space<vmem>>, vector<8x128xf32>
    tpu.vector_store %arg7[%c0_14, %c0_15], %17 {strides = array<i32>} : memref<8x128xf32, #tpu.memory_space<vmem>>, vector<8x128xf32>,
    return
  }
  func.func @transform_0(%arg0: i32) -> (i32, i32) {
    %c0_i32 = arith.constant 0 : i32
    %c0_i32_0 = arith.constant 0 : i32
    return %arg0, %c0_i32 : i32, i32
  }
  func.func @transform_1(%arg0: i32) -> (i32, i32) {
    %c0_i32 = arith.constant 0 : i32
    %c0_i32_0 = arith.constant 0 : i32
    %c0_i32_1 = arith.constant 0 : i32
    return %c0_i32, %c0_i32_0 : i32, i32
  }
  func.func @transform_2(%arg0: i32) -> (i32, i32) {
    %c0_i32 = arith.constant 0 : i32
    %c0_i32_0 = arith.constant 0 : i32
    %c0_i32_1 = arith.constant 0 : i32
    return %c0_i32, %c0_i32_0 : i32, i32
  }
  func.func @transform_3(%arg0: i32) -> (i32, i32) {
    %c0_i32 = arith.constant 0 : i32
    %c0_i32_0 = arith.constant 0 : i32
    %c0_i32_1 = arith.constant 0 : i32
    return %c0_i32, %c0_i32_0 : i32, i32
  }
  func.func @transform_4(%arg0: i32) -> (i32, i32) {
    %c0_i32 = arith.constant 0 : i32
    %c0_i32_0 = arith.constant 0 : i32
    %c0_i32_1 = arith.constant 0 : i32
    return %c0_i32, %c0_i32_0 : i32, i32
  }
  func.func @transform_5(%arg0: i32) -> (i32, i32) {
    %c0_i32 = arith.constant 0 : i32
    %c0_i32_0 = arith.constant 0 : i32
    %c0_i32_1 = arith.constant 0 : i32
    return %c0_i32, %c0_i32_0 : i32, i32
  }
  func.func @transform_6(%arg0: i32) -> (i32, i32) {
    %c0_i32 = arith.constant 0 : i32
    %c0_i32_0 = arith.constant 0 : i32
    return %arg0, %c0_i32 : i32, i32
  }
}

</mosaic_0001>

<bundles_post_ra>
// kernel: tpu_custom_call.1
= control target key start
LH: loop header
LB: loop body
LE: loop exit
PB: predicated region body
PF: predicated region fallthrough
CT: control target
= control target key end

     0   :  { %s568_s0 = inlined_call_operand.vmem [shape: bf16[64,128], index: 0, kind: input, shape index: {}]   ;;  %s569_s1 = inlined_call_operand.vmem [shape: bf16[128,24], index: 1, kind: input, shape index: {}]   ;;  %s570_s2 = inlined_call_operand.vmem [shape: f32[1,24], index: 2, kind: input, shape index: {}]   ;;  %s571_s3 = inlined_call_operand.vmem [shape: f32[64,24], index: 3, kind: input, shape index: {}]   ;;  %s572_s4 = inlined_call_operand.vmem [shape: bf16[24,128], index: 4, kind: input, shape index: {}]   ;;  %s573_s5 = inlined_call_operand.vmem [shape: f32[1,128], index: 5, kind: input, shape index: {}]   ;;  %s574_s6 = inlined_call_operand.hbm [shape: f32[8,128], index: 6, kind: output, shape index: {}]  }
   0x1   :  { %v391_v0 = vld [vmem:[%s569_s1 + $0x38] sm:$0xff]  ;;  %v390_v1 = vld [vmem:[%s569_s1 + $0x30] sm:$0xff] }
   0x2   :  { %393 = vmatpush.bf16.msra.mxu2 %v391_v0  ;;  %394 = vmatpush.bf16.msra.mxu3 %v391_v0 }
   0x3   :  { %125 = vmatpush.bf16.msra.mxu0 %v391_v0 }
   0x4   :  { %11 = vsyncpa [#allocation3], 0  ;;  %v389_v2 = vld [vmem:[%s569_s1 + $0x28] sm:$0xff]  ;;  %v388_v3 = vld [vmem:[%s569_s1 + $0x20] sm:$0xff]  ;;  %vm178_vm0 = vcmask 195584   ;;  %vm293_vm1 = vcmask 1043456  }
   0x5   :  { %v387_v4 = vld [vmem:[%s569_s1 + $0x18] sm:$0xff]  ;;  %v386_v5 = vld [vmem:[%s569_s1 + $0x10] sm:$0xff]  ;;  %v385_v6 = vld [vmem:[%s569_s1 + $0x8] sm:$0xff]  ;;  %vm266_vm2 = vcmask 1041409   ;;  %vm268_vm3 = vcmask 1042434   ;;  %vm270_vm4 = vcmask 1043459  }
   0x6   :  { %395 = vmatpush.bf16.msra.mxu2 %v390_v1  ;;  %396 = vmatpush.bf16.msra.mxu3 %v390_v1  ;;  %v384_v7 = vld [vmem:[%s569_s1] sm:$0xff]  ;;  %v381_v8 = vld [vmem:[%s568_s0 + $0x8] sm:$0xff]  ;;  %v382_v9 = vld [vmem:[%s568_s0 + $0x10] sm:$0xff]  ;;  %vm272_vm5 = vcmask 1044484   ;;  %vm274_vm6 = vcmask 1045509   ;;  %vm276_vm7 = vcmask 1046534  }
   0x7   :  { %126 = vmatpush.bf16.msra.mxu0 %v390_v1  ;;  %v380_v10 = vld [vmem:[%s568_s0] sm:$0xff]  ;;  %v383_v11 = vld [vmem:[%s568_s0 + $0x18] sm:$0xff]  ;;  %v164_v23 = vld [vmem:[%s571_s3 + $0x10] sm:$0xff]  ;;  %vm278_vm8 = vcmask 1047559   ;;  %s438_s16 = smov [#allocation2]   ;;  %s318_s19 = sshll.u32 %s574_s6, 4  ;;  %s319_s19 = int_to_ptr.hbm [resolvable:$true] %s318_s19 }
   0x8   :  { %v513_v12 = vld [vmem:[%s570_s2] ss:$0 sm:$0xff]  ;;  %v163_v31 = vld [vmem:[%s571_s3 + $0x8] sm:$0xff]  ;;  %v165_v48 = vld [vmem:[%s571_s3 + $0x18] sm:$0xff]  ;;  %s316_s17 = sshll.u32 %s438_s16, 4  ;;  %s317_s17 = int_to_ptr.vmem [resolvable:$true] %s316_s17 }
   0x9   :  { %v162_v15 = vld [vmem:[%s571_s3] sm:$0xff]  ;;  %v245_v35 = vld [vmem:[%s572_s4 + $0x8] sm:$0xf] }
   0xa   :  { %397 = vmatpush.bf16.msra.mxu2 %v389_v2  ;;  %398 = vmatpush.bf16.msra.mxu3 %v389_v2  ;;  %v166_v27 = vld [vmem:[%s571_s3 + $0x20] sm:$0xff]  ;;  %v286_v37 = vunpack.c.l.b16 %v245_v35  ;;  %v167_v49 = vld [vmem:[%s571_s3 + $0x28] sm:$0xff] }
   0xb   :  { %127 = vmatpush.bf16.msra.mxu0 %v389_v2  ;;  %v392_v59 = vld [vmem:[%s572_s4] sm:$0xff] }
   0xc   :  { %v288_v44 = vpack.c.b16 %v286_v37, %v286_v37 }
   0xe   :  { %399 = vmatpush.bf16.msra.mxu2 %v388_v3  ;;  %400 = vmatpush.bf16.msra.mxu3 %v388_v3  ;;  %v295_v54 = vsel %vm293_vm1, %v288_v44, 0 }
   0xf   :  { %128 = vmatpush.bf16.msra.mxu0 %v388_v3  ;;  %303 = vmatpush.bf16.msra.mxu1 %v295_v54 }
  0x12   :  { %401 = vmatpush.bf16.msra.mxu2 %v387_v4  ;;  %402 = vmatpush.bf16.msra.mxu3 %v387_v4 }
  0x13   :  { %129 = vmatpush.bf16.msra.mxu0 %v387_v4  ;;  %304 = vmatpush.bf16.msra.mxu1 %v392_v59 }
  0x16   :  { %403 = vmatpush.bf16.msra.mxu2 %v386_v5  ;;  %404 = vmatpush.bf16.msra.mxu3 %v386_v5 }
  0x17   :  { %130 = vmatpush.bf16.msra.mxu0 %v386_v5 }
  0x1a   :  { %405 = vmatpush.bf16.msra.mxu2 %v385_v6  ;;  %406 = vmatpush.bf16.msra.mxu3 %v385_v6 }
  0x1b   :  { %131 = vmatpush.bf16.msra.mxu0 %v385_v6 }
  0x1e   :  { %407 = vmatpush.bf16.msra.mxu2 %v384_v7  ;;  %408 = vmatpush.bf16.msra.mxu3 %v384_v7 }
  0x1f   :  { %132 = vmatpush.bf16.msra.mxu0 %v384_v7 }
  0x21   :  { %138 = vmatmul.bf16.vlgmr.msra.gmra.mxu2 %v381_v8  ;;  %143 = vmatmul.bf16.vlgmr.msra.gmra.mxu3 %v382_v9  ;;  %v168_v8 = vld [vmem:[%s571_s3 + $0x30] sm:$0xff] }
  0x22   :  { %133 = vmatmul.bf16.vlgmr.msra.gmra.mxu0 %v380_v10 }
  0x31   :  { %148 = vmatmul.bf16.gmra.mxu3 %v383_v11 }
  0x9f   :  { %v134_v13 = vpop.f32.mrf.mxu0 }
  0xa0   :  { %v135_v14 = vadd.f32 %v513_v12, %v134_v13 }
  0xa2   :  { %v154_v16 = vmax.f32 %v135_v14, 0.0 }
  0xa4   :  { %v170_v17 = vmul.f32 %v162_v15, %v154_v16  ;;  %v139_v18 = vpop.f32.mrf.mxu2  ;;  %v144_v19 = vpop.f32.mrf.mxu3 }
  0xa5   :  { %v140_v20 = vadd.f32 %v513_v12, %v139_v18  ;;  %v145_v21 = vadd.f32 %v513_v12, %v144_v19 }
  0xa6   :  { %v179_v22 = vsel %vm178_vm0, %v170_v17, -inf }
  0xa7   :  { %v180_v24 = vrot.slane %v179_v22, 4  ;;  %v156_v25 = vmax.f32 %v140_v20, 0.0  ;;  %v158_v26 = vmax.f32 %v145_v21, 0.0  ;;  %v136_v28 = vpop.f32.mrf.mxu0 }
  0xa8   :  { %v137_v29 = vadd.f32 %v513_v12, %v136_v28 }
  0xa9   :  { %v172_v30 = vmul.f32 %v164_v23, %v156_v25  ;;  %v181_v32 = vmax.f32 %v179_v22, %v180_v24  ;;  %v174_v33 = vmul.f32 %v166_v27, %v158_v26 }
  0xaa   :  { %v155_v34 = vmax.f32 %v137_v29, 0.0 }
  0xab   :  { %v193_v36 = vsel %vm178_vm0, %v172_v30, -inf  ;;  %v182_v45 = vrot.slane %v181_v32, 2  ;;  %v207_v46 = vsel %vm178_vm0, %v174_v33, -inf  ;;  %v169_v30 = vld [vmem:[%s571_s3 + $0x38] sm:$0xff] }
  0xac   :  { %v194_v38 = vrot.slane %v193_v36, 4  ;;  %v171_v39 = vmul.f32 %v163_v31, %v155_v34  ;;  %v141_v40 = vpop.f32.mrf.mxu2  ;;  %v146_v41 = vpop.f32.mrf.mxu3  ;;  %v208_v55 = vrot.slane %v207_v46, 4 }
  0xad   :  { %v142_v42 = vadd.f32 %v513_v12, %v141_v40  ;;  %v147_v43 = vadd.f32 %v513_v12, %v146_v41  ;;  %v183_v60 = vmax.f32 %v181_v32, %v182_v45 }
  0xae   :  { %v186_v47 = vsel %vm178_vm0, %v171_v39, -inf  ;;  %v195_v50 = vmax.f32 %v193_v36, %v194_v38  ;;  %v209_v4 = vmax.f32 %v207_v46, %v208_v55 }
  0xaf   :  { %v187_v51 = vrot.slane %v186_v47, 4  ;;  %v157_v52 = vmax.f32 %v142_v42, 0.0  ;;  %v159_v53 = vmax.f32 %v147_v43, 0.0  ;;  %v184_v9 = vrot.slane %v183_v60, 1 }
  0xb0   :  { %v196_v61 = vrot.slane %v195_v50, 2  ;;  %v210_v16 = vrot.slane %v209_v4, 2 }
  0xb1   :  { %v188_v56 = vmax.f32 %v186_v47, %v187_v51  ;;  %v173_v57 = vmul.f32 %v165_v48, %v157_v52  ;;  %v175_v58 = vmul.f32 %v167_v49, %v159_v53  ;;  %v185_v19 = vmax.f32 %v183_v60, %v184_v9 }
  0xb2   :  { %v197_v10 = vmax.f32 %v195_v50, %v196_v61  ;;  %v211_v27 = vmax.f32 %v209_v4, %v210_v16 }
  0xb3   :  { %v189_v62 = vrot.slane %v188_v56, 2  ;;  %v200_v63 = vsel %vm178_vm0, %v173_v57, -inf  ;;  %v214_v0 = vsel %vm178_vm0, %v175_v58, -inf  ;;  %v235_v31 = vpack.c.bf16 %v185_v19, %v185_v19 }
  0xb4   :  { %v201_v1 = vrot.slane %v200_v63, 4  ;;  %v215_v2 = vrot.slane %v214_v0, 4  ;;  %v149_v3 = vpop.f32.mrf.mxu3  ;;  %v198_v20 = vrot.slane %v197_v10, 1  ;;  %v212_v38 = vrot.slane %v211_v27, 1 }
  0xb5   :  { %v190_v5 = vmax.f32 %v188_v56, %v189_v62  ;;  %v150_v6 = vadd.f32 %v513_v12, %v149_v3  ;;  %v258_v41 = vunpack.c.l.b16 %v235_v31 }
  0xb6   :  { %v202_v7 = vmax.f32 %v200_v63, %v201_v1  ;;  %v216_v11 = vmax.f32 %v214_v0, %v215_v2  ;;  %v199_v32 = vmax.f32 %v197_v10, %v198_v20  ;;  %v213_v48 = vmax.f32 %v211_v27, %v212_v38  ;;  %v411_v10 = vld [vmem:[%s573_s5] ss:$0 sm:$0xff] }
  0xb7   :  { %v160_v13 = vmax.f32 %v150_v6, 0.0  ;;  %v191_v14 = vrot.slane %v190_v5, 1 }
  0xb8   :  { %v203_v15 = vrot.slane %v202_v7, 2  ;;  %v217_v21 = vrot.slane %v216_v11, 2  ;;  %v237_v42 = vpack.c.bf16 %v199_v32, %v199_v32  ;;  %v239_v56 = vpack.c.bf16 %v213_v48, %v213_v48 }
  0xb9   :  { %v176_v17 = vmul.f32 %v168_v8, %v160_v13  ;;  %v192_v23 = vmax.f32 %v190_v5, %v191_v14 }
  0xba   :  { %v204_v18 = vmax.f32 %v202_v7, %v203_v15  ;;  %v218_v33 = vmax.f32 %v216_v11, %v217_v21  ;;  %v260_v50 = vunpack.c.l.b16 %v237_v42  ;;  %v262_v63 = vunpack.c.l.b16 %v239_v56 }
  0xbb   :  { %v221_v22 = vsel %vm178_vm0, %v176_v17, -inf  ;;  %v236_v35 = vpack.c.bf16 %v192_v23, %v192_v23 }
  0xbc   :  { %v205_v24 = vrot.slane %v204_v18, 1  ;;  %v222_v25 = vrot.slane %v221_v22, 4  ;;  %v151_v26 = vpop.f32.mrf.mxu3  ;;  %v219_v43 = vrot.slane %v218_v33, 1 }
  0xbd   :  { %v152_v28 = vadd.f32 %v513_v12, %v151_v26  ;;  %v259_v44 = vunpack.c.l.b16 %v236_v35 }
  0xbe   :  { %v223_v29 = vmax.f32 %v221_v22, %v222_v25  ;;  %v206_v36 = vmax.f32 %v204_v18, %v205_v24  ;;  %v220_v54 = vmax.f32 %v218_v33, %v219_v43 }
  0xbf   :  { %v161_v34 = vmax.f32 %v152_v28, 0.0  ;;  %v267_v52 = vsel %vm266_vm2, %v259_v44, %v258_v41 }
  0xc0   :  { %v224_v37 = vrot.slane %v223_v29, 2  ;;  %v238_v45 = vpack.c.bf16 %v206_v36, %v206_v36  ;;  %v269_v59 = vsel %vm268_vm3, %v260_v50, %v267_v52  ;;  %v240_v60 = vpack.c.bf16 %v220_v54, %v220_v54 }
  0xc1   :  { %v177_v39 = vmul.f32 %v169_v30, %v161_v34 }
  0xc2   :  { %v225_v40 = vmax.f32 %v223_v29, %v224_v37  ;;  %v261_v53 = vunpack.c.l.b16 %v238_v45  ;;  %v263_v3 = vunpack.c.l.b16 %v240_v60 }
  0xc3   :  { %v228_v12 = vsel %vm178_vm0, %v177_v39, -inf }
  0xc4   :  { %v226_v46 = vrot.slane %v225_v40, 1  ;;  %v229_v47 = vrot.slane %v228_v12, 4  ;;  %v271_v62 = vsel %vm270_vm4, %v261_v53, %v269_v59 }
  0xc5   :  { %v273_v2 = vsel %vm272_vm5, %v262_v63, %v271_v62 }
  0xc6   :  { %v230_v49 = vmax.f32 %v228_v12, %v229_v47  ;;  %v227_v51 = vmax.f32 %v225_v40, %v226_v46  ;;  %v275_v6 = vsel %vm274_vm6, %v263_v3, %v273_v2 }
  0xc8   :  { %v231_v55 = vrot.slane %v230_v49, 2  ;;  %v241_v58 = vpack.c.bf16 %v227_v51, %v227_v51 }
  0xca   :  { %v232_v57 = vmax.f32 %v230_v49, %v231_v55  ;;  %v264_v1 = vunpack.c.l.b16 %v241_v58 }
  0xcc   :  { %v233_v61 = vrot.slane %v232_v57, 1  ;;  %v277_v7 = vsel %vm276_vm7, %v264_v1, %v275_v6 }
  0xce   :  { %v234_v0 = vmax.f32 %v232_v57, %v233_v61 }
  0xd0   :  { %v242_v4 = vpack.c.bf16 %v234_v0, %v234_v0 }
  0xd2   :  { %v265_v5 = vunpack.c.l.b16 %v242_v4 }
  0xd4   :  { %v279_v8 = vsel %vm278_vm8, %v265_v5, %v277_v7 }
  0xd5   :  { %v280_v9 = vpack.c.b16 %v279_v8, %v279_v8 }
  0xd7   :  { %379 = vmatmul.msk.bf16.vlgmr.msra.gmra.mxu1 %vm178_vm0, %v280_v9 }
 0x154   :  { %v306_v11 = vpop.f32.mrf.mxu1 }
 0x155   :  { %v307_v13 = vadd.f32 %v411_v10, %v306_v11 }
 0x157   :  { %310 = vst [vmem:[#allocation2] sm:$0xff] %v307_v13 }
 0x158   :  { %321 = dma.vmem_to_hbm [thread:$0]  %s317_s17, 128, %s319_s19, [#allocation3]  }
 0x15c   :  { %v308_v14 = vpop.f32.mrf.mxu1 }
 0x15d   :  { %436 = dma.done.wait [#allocation3], 128  }
 0x15e   :  { %437 = vsyncadd [#allocation3], 4294967168 }
 0x15f   :  { %326 = vsyncpa [#allocation3], 1 }

</bundles_post_ra>
